<compile_context>
chip_gen: v7x
topology: tpu7x:2x2x1
jax: 0.10.0
libtpu: 0.0.40
codegen_flags: <defaults>
</compile_context>

<pallas_src>
import functools

import jax
import jax.numpy as jnp
from jax import lax
from jax.experimental import pallas as pl
from jax.experimental.pallas import tpu as pltpu


def _round_up(n, m):
    return ((n + m - 1) // m) * m


def _gelu_exact(x):
    # PyTorch nn.GELU() default is the exact erf formulation.
    return 0.5 * x * (1.0 + lax.erf(x * (1.0 / jnp.sqrt(2.0).astype(x.dtype))))


def _pack_factor(c_in, hid, c_out):
    # Smallest P that makes every feature axis a multiple of 128 lanes, with a
    # cap so the replicated block-diagonal weights stay small.
    for p in (1, 2, 4, 8):
        if ((p * c_in) % 128 == 0 and (p * hid) % 128 == 0
                and (p * c_out) % 128 == 0 and p * max(c_in, hid, c_out) <= 1024):
            return p
    return 1


def _block_diag(w, p):
    # (a, b) -> (p*a, p*b) with w repeated along the diagonal.
    if p == 1:
        return w
    a, b = w.shape
    eye = jnp.eye(p, dtype=w.dtype)
    return (eye[:, None, :, None] * w[None, :, None, :]).reshape(p * a, p * b)


def mlp_kernel(x_ref, w1_ref, b1_ref, w2_ref, b2_ref, o_ref):
    # fc1 -> GELU -> fc2 for one tile of (packed) token rows.
    # Dropout(p=0.0) is identity and is elided.
    x = x_ref[...].astype(w1_ref.dtype)
    h = jnp.dot(x, w1_ref[...], preferred_element_type=jnp.float32) + b1_ref[...]
    h = _gelu_exact(h)
    # Cast the f32 GELU output to the weight dtype before fc2: no-op for f32
    # weights; for bf16 weights trades a little precision for native MXU
    # throughput (accumulation stays f32).
    o = jnp.dot(h.astype(w2_ref.dtype), w2_ref[...],
                preferred_element_type=jnp.float32) + b2_ref[...]
    o_ref[...] = o.astype(o_ref.dtype)


@functools.partial(jax.jit, static_argnames=("tile_t",))
def mlp_pallas(x, w1, b1, w2, b2, *, tile_t=8192):
    """x: (..., C_in);  w1: (C_in, H);  b1: (H,);  w2: (H, C_out);  b2: (C_out,)."""
    orig_shape = x.shape
    c_in = orig_shape[-1]
    hid = w1.shape[1]
    c_out = w2.shape[1]

    x2d = x.reshape(-1, c_in)
    t = x2d.shape[0]

    # --- lane-dense packing -------------------------------------------------
    p = _pack_factor(c_in, hid, c_out)
    t_rnd = _round_up(t, p)
    if t_rnd != t:
        # Only up to P-1 pad rows so the pack reshape is legal; the per-tile
        # remainder is handled by Pallas' masked edge block, not by padding.
        x2d = jnp.pad(x2d, ((0, t_rnd - t), (0, 0)))
    tp = t_rnd // p
    pc_in, ph, pc_out = p * c_in, p * hid, p * c_out

    xp = x2d.reshape(tp, pc_in)            # row-major repack: free reshape
    w1p = _block_diag(w1, p)               # (pc_in, ph)  block-diagonal
    w2p = _block_diag(w2, p)               # (ph, pc_out) block-diagonal
    b1p = jnp.tile(b1, p).reshape(1, ph)
    b2p = jnp.tile(b2, p).reshape(1, pc_out)

    # --- tile selection -----------------------------------------------------
    itemsize = jnp.dtype(x.dtype).itemsize
    sub = max(8, 32 // itemsize)                      # sublane multiple per dtype
    desired = _round_up(max(1, tile_t // p), sub)     # requested packed-row tile
    half = _round_up(pl.cdiv(tp, 2), sub)             # keep >=2 grid steps (v7x 2 TCs)
    tile = min(desired, half)
    if tile >= tp:
        tile = tp                                      # single full-array block

    grid = (pl.cdiv(tp, tile),)
    n_rows_comp = grid[0] * tile

    # --- VMEM budget / cost hint --------------------------------------------
    w_bytes = ((pc_in * ph + ph * pc_out) * jnp.dtype(w1.dtype).itemsize
               + (ph + pc_out) * jnp.dtype(b1.dtype).itemsize)
    vmem_est = (2 * tile * (pc_in + pc_out) * itemsize    # x + out, double-buffered
                + 2 * tile * ph * 4                       # f32 hidden intermediate
                + 2 * w_bytes
                + (4 << 20))                              # headroom
    vmem_limit = int(min(max(vmem_est, 32 << 20), 48 << 20))  # <=48 MiB fits v7x

    cost = pl.CostEstimate(
        flops=2 * n_rows_comp * (pc_in * ph + ph * pc_out),
        transcendentals=n_rows_comp * ph,
        bytes_accessed=tp * (pc_in + pc_out) * itemsize + w_bytes,
    )

    out = pl.pallas_call(
        mlp_kernel,
        out_shape=jax.ShapeDtypeStruct((tp, pc_out), x.dtype),
        grid_spec=pltpu.PrefetchScalarGridSpec(
            num_scalar_prefetch=0,
            grid=grid,
            in_specs=[
                pl.BlockSpec((tile, pc_in), lambda i: (i, 0)),   # x tile
                pl.BlockSpec((pc_in, ph), lambda i: (0, 0)),     # W1 (VMEM-resident)
                pl.BlockSpec((1, ph), lambda i: (0, 0)),         # b1
                pl.BlockSpec((ph, pc_out), lambda i: (0, 0)),    # W2 (VMEM-resident)
                pl.BlockSpec((1, pc_out), lambda i: (0, 0)),     # b2
            ],
            out_specs=pl.BlockSpec((tile, pc_out), lambda i: (i, 0)),
        ),
        compiler_params=pltpu.CompilerParams(
            dimension_semantics=("parallel",),
            vmem_limit_bytes=vmem_limit),
        cost_estimate=cost,
    )(xp, w1p, b1p, w2p, b2p)

    out = out.reshape(tp * p, c_out)        # unpack tokens: free reshape
    if t_rnd != t:
        out = out[:t]
    return out.reshape(*orig_shape[:-1], c_out)


def mlp_reference(x, w1, b1, w2, b2):
    h = jnp.dot(x, w1) + b1
    h = 0.5 * h * (1.0 + lax.erf(h / jnp.sqrt(2.0)))
    return jnp.dot(h, w2) + b2


if __name__ == "__main__":
    # Module config: in_features=32, hidden_features=64, out_features=32
    # (out_features defaults to in_features), drop=0.0.
    in_features = 32
    hidden_features = 64
    out_features = 32
    batch, seq = 2, 8   # x: (2, 8, 32)

    key = jax.random.PRNGKey(0)
    k_x, k_w1, k_b1, k_w2, k_b2 = jax.random.split(key, 5)

    x = jax.random.normal(k_x, (batch, seq, in_features), dtype=jnp.float32)
    # Deterministic parameter init (uniform, matching nn.Linear's fan-in scale).
    lim1 = 1.0 / jnp.sqrt(in_features)
    lim2 = 1.0 / jnp.sqrt(hidden_features)
    w1 = jax.random.uniform(k_w1, (in_features, hidden_features),
                            minval=-lim1, maxval=lim1, dtype=jnp.float32)
    b1 = jax.random.uniform(k_b1, (hidden_features,),
                            minval=-lim1, maxval=lim1, dtype=jnp.float32)
    w2 = jax.random.uniform(k_w2, (hidden_features, out_features),
                            minval=-lim2, maxval=lim2, dtype=jnp.float32)
    b2 = jax.random.uniform(k_b2, (out_features,),
                            minval=-lim2, maxval=lim2, dtype=jnp.float32)

    # Small-shape check (T=16 -> 4 packed rows, single full-array block).
    out = jax.block_until_ready(mlp_pallas(x, w1, b1, w2, b2))
    ref = mlp_reference(x, w1, b1, w2, b2)
    assert out.shape == (batch, seq, out_features)
    assert jnp.allclose(out, ref, atol=1e-5, rtol=1e-5), "mismatch vs reference"

    # Multi-step grid with a masked partial tail block (no jnp.pad / out-slice):
    # T=200 -> 50 packed rows, tile_t=128 -> tile=32 packed rows, grid=(2,).
    x_big = jax.random.normal(jax.random.PRNGKey(1), (2, 100, in_features),
                              dtype=jnp.float32)
    out_big = jax.block_until_ready(mlp_pallas(x_big, w1, b1, w2, b2, tile_t=128))
    ref_big = mlp_reference(x_big, w1, b1, w2, b2)
    assert out_big.shape == (2, 100, out_features)
    assert jnp.allclose(out_big, ref_big, atol=1e-5, rtol=1e-5), "ragged mismatch"

    # T not a multiple of the pack factor (T=21): exercises the tiny pack-pad path.
    x_odd = jax.random.normal(jax.random.PRNGKey(2), (3, 7, in_features),
                              dtype=jnp.float32)
    out_odd = jax.block_until_ready(mlp_pallas(x_odd, w1, b1, w2, b2, tile_t=64))
    ref_odd = mlp_reference(x_odd, w1, b1, w2, b2)
    assert out_odd.shape == (3, 7, out_features)
    assert jnp.allclose(out_odd, ref_odd, atol=1e-5, rtol=1e-5), "pack-pad mismatch"

    print("KERNEL_OK")
</pallas_src>

<mosaic_0001>
module attributes {stable_mosaic.version = 11 : i64} {
  func.func @mlp_kernel(%arg0: i32, %arg1: memref<4x128xf32, #tpu.memory_space<vmem>>, %arg2: memref<128x256xf32, #tpu.memory_space<vmem>>, %arg3: memref<1x256xf32, #tpu.memory_space<vmem>>, %arg4: memref<256x128xf32, #tpu.memory_space<vmem>>, %arg5: memref<1x128xf32, #tpu.memory_space<vmem>>, %arg6: memref<4x128xf32, #tpu.memory_space<vmem>>) attributes {dimension_semantics = [#tpu.dimension_semantics<parallel>], iteration_bounds = array<i64: 1>, scalar_prefetch = 0 : i64, scratch_operands = 0 : i64, tpu.core_type = #tpu.core_type<tc>, window_params = [{transform_indices = @transform_0, window_bounds = array<i64: 4, 128>}, {pipeline_mode = #tpu.pipeline_mode<synchronous>, transform_indices = @transform_1, window_bounds = array<i64: 128, 256>}, {pipeline_mode = #tpu.pipeline_mode<synchronous>, transform_indices = @transform_2, window_bounds = array<i64: 1, 256>}, {pipeline_mode = #tpu.pipeline_mode<synchronous>, transform_indices = @transform_3, window_bounds = array<i64: 256, 128>}, {pipeline_mode = #tpu.pipeline_mode<synchronous>, transform_indices = @transform_4, window_bounds = array<i64: 1, 128>}, {transform_indices = @transform_5, window_bounds = array<i64: 4, 128>}]} {
    %c0 = arith.constant 0 : index
    %c0_0 = arith.constant 0 : index
    %0 = vector.load %arg1[%c0, %c0_0] : memref<4x128xf32, #tpu.memory_space<vmem>>, vector<4x128xf32>
    %c0_1 = arith.constant 0 : index
    %c0_2 = arith.constant 0 : index
    %1 = vector.load %arg2[%c0_1, %c0_2] : memref<128x256xf32, #tpu.memory_space<vmem>>, vector<128x256xf32>
    %cst = arith.constant dense<0.000000e+00> : vector<4x256xf32>
    %2 = tpu.matmul %0, %1, %cst {dimension_numbers = #tpu.dot_dimension_numbers<[1], [0], [0], [1], [0, 0, 1, 1], [], []>} : vector<4x128xf32>, vector<128x256xf32>, vector<4x256xf32> -> vector<4x256xf32>
    %c0_3 = arith.constant 0 : index
    %c0_4 = arith.constant 0 : index
    %3 = vector.load %arg3[%c0_3, %c0_4] : memref<1x256xf32, #tpu.memory_space<vmem>>, vector<1x256xf32>
    %4 = vector.broadcast %3 : vector<1x256xf32> to vector<4x256xf32>
    %5 = arith.addf %2, %4 : vector<4x256xf32>
    %cst_5 = arith.constant 5.000000e-01 : f32
    %6 = vector.broadcast %cst_5 : f32 to vector<4x256xf32>
    %7 = arith.mulf %6, %5 : vector<4x256xf32>
    %cst_6 = arith.constant 2.000000e+00 : f32
    %8 = math.sqrt %cst_6 : f32
    %cst_7 = arith.constant 1.000000e+00 : f32
    %9 = arith.divf %cst_7, %8 : f32
    %10 = vector.broadcast %9 : f32 to vector<4x256xf32>
    %11 = arith.mulf %5, %10 : vector<4x256xf32>
    %12 = math.erf %11 : vector<4x256xf32>
    %cst_8 = arith.constant 1.000000e+00 : f32
    %13 = vector.broadcast %cst_8 : f32 to vector<4x256xf32>
    %14 = arith.addf %13, %12 : vector<4x256xf32>
    %15 = arith.mulf %7, %14 : vector<4x256xf32>
    %c0_9 = arith.constant 0 : index
    %c0_10 = arith.constant 0 : index
    %16 = vector.load %arg4[%c0_9, %c0_10] : memref<256x128xf32, #tpu.memory_space<vmem>>, vector<256x128xf32>
    %cst_11 = arith.constant dense<0.000000e+00> : vector<4x128xf32>
    %17 = tpu.matmul %15, %16, %cst_11 {dimension_numbers = #tpu.dot_dimension_numbers<[1], [0], [0], [1], [0, 0, 1, 1], [], []>} : vector<4x256xf32>, vector<256x128xf32>, vector<4x128xf32> -> vector<4x128xf32>
    %c0_12 = arith.constant 0 : index
    %c0_13 = arith.constant 0 : index
    %18 = vector.load %arg5[%c0_12, %c0_13] : memref<1x128xf32, #tpu.memory_space<vmem>>, vector<1x128xf32>
    %19 = vector.broadcast %18 : vector<1x128xf32> to vector<4x128xf32>
    %20 = arith.addf %17, %19 : vector<4x128xf32>
    %c0_14 = arith.constant 0 : index
    %c0_15 = arith.constant 0 : index
    %21 = vector.load %arg6[%c0_14, %c0_15] : memref<4x128xf32, #tpu.memory_space<vmem>>, vector<4x128xf32>
    tpu.vector_store %arg6[%c0_14, %c0_15], %20 {strides = array<i32>} : memref<4x128xf32, #tpu.memory_space<vmem>>, vector<4x128xf32>,
    return
  }
  func.func @transform_0(%arg0: i32) -> (i32, i32) {
    %c0_i32 = arith.constant 0 : i32
    %c0_i32_0 = arith.constant 0 : i32
    return %arg0, %c0_i32 : i32, i32
  }
  func.func @transform_1(%arg0: i32) -> (i32, i32) {
    %c0_i32 = arith.constant 0 : i32
    %c0_i32_0 = arith.constant 0 : i32
    %c0_i32_1 = arith.constant 0 : i32
    return %c0_i32, %c0_i32_0 : i32, i32
  }
  func.func @transform_2(%arg0: i32) -> (i32, i32) {
    %c0_i32 = arith.constant 0 : i32
    %c0_i32_0 = arith.constant 0 : i32
    %c0_i32_1 = arith.constant 0 : i32
    return %c0_i32, %c0_i32_0 : i32, i32
  }
  func.func @transform_3(%arg0: i32) -> (i32, i32) {
    %c0_i32 = arith.constant 0 : i32
    %c0_i32_0 = arith.constant 0 : i32
    %c0_i32_1 = arith.constant 0 : i32
    return %c0_i32, %c0_i32_0 : i32, i32
  }
  func.func @transform_4(%arg0: i32) -> (i32, i32) {
    %c0_i32 = arith.constant 0 : i32
    %c0_i32_0 = arith.constant 0 : i32
    %c0_i32_1 = arith.constant 0 : i32
    return %c0_i32, %c0_i32_0 : i32, i32
  }
  func.func @transform_5(%arg0: i32) -> (i32, i32) {
    %c0_i32 = arith.constant 0 : i32
    %c0_i32_0 = arith.constant 0 : i32
    return %arg0, %c0_i32 : i32, i32
  }
}

</mosaic_0001>

<bundles_post_ra>
// kernel: tile.13
= control target key start
LH: loop header
LB: loop body
LE: loop exit
PB: predicated region body
PF: predicated region fallthrough
CT: control target
= control target key end

     0   :  { %s22_s0 = inlined_call_operand.vmem [shape: f32[64], index: 0, kind: input, shape index: {}]   ;;  %s23_s1 = inlined_call_operand.vmem [shape: f32[4,64], index: 1, kind: output, shape index: {}]  }
   0x1   :  { %v4_v0 = vld [vmem:[%s22_s0] ss:$0 sm:$0xff] }
   0x2   :  { %5 = vst [vmem:[%s23_s1] sm:$0xf] %v4_v0 }

// kernel: tile.14
= control target key start
LH: loop header
LB: loop body
LE: loop exit
PB: predicated region body
PF: predicated region fallthrough
CT: control target
= control target key end

     0   :  { %s6_s8 = smov 3  ;;  %vm8_vm0 = vcmask 523264   ;;  %s30_s9 = smov 64   ;;  %vm15_vm1 = vcmask 1048064   ;;  %s50_s0 = inlined_call_operand.vmem [shape: f32[4,64], index: 0, kind: input, shape index: {}]   ;;  %s51_s1 = inlined_call_operand.vmem [shape: f32[1,256], index: 1, kind: output, shape index: {}]  }
   0x1   :  { %v4_v0 = vld [vmem:[%s50_s0] sm:$0xf]  ;;  %s11_s0 = smov 3 }
   0x2   :  { %5 = vst [vmem:[#allocation1] sm:$0xf] %v4_v0 }
   0x9   :  { %v12_v1 = vld [vmem:[#allocation1 + $0x1] ss:$2 sm:%s11_s0]   ;;  %v7_v2 = vld [vmem:[#allocation1] ss:$2 sm:%s6_s8]  }
   0xa   :  { %13 = vrot.lane.b32.xlu0 %v12_v1, %s30_s9  ;;  %9 = vst.msk [vmem:[#allocation0] ss:$8 sm:$0x3] %vm8_vm0, %v7_v2  }
  0x7c   :  { %v14_v3 = vpop.permute.xlu0 %13  }
  0x7d   :  { %16 = vst.msk [vmem:[#allocation0] ss:$8 sm:$0x3] %vm15_vm1, %v14_v3  }
  0x84   :  { %v20_v4 = vld [vmem:[#allocation0] sm:$0x1]  ;;  %v24_v5 = vld [vmem:[#allocation0 + $0x8] sm:$0x1] }
  0x85   :  { %22 = vst [vmem:[%s51_s1] sm:$0x1] %v20_v4  ;;  %28 = vst [vmem:[%s51_s1 + $0x1] sm:$0x1] %v24_v5 }

// kernel: tile.18
= control target key start
LH: loop header
LB: loop body
LE: loop exit
PB: predicated region body
PF: predicated region fallthrough
CT: control target
= control target key end

     0   :  { %s22_s0 = inlined_call_operand.vmem [shape: f32[32], index: 0, kind: input, shape index: {}]   ;;  %s23_s1 = inlined_call_operand.vmem [shape: f32[4,32], index: 1, kind: output, shape index: {}]  }
   0x1   :  { %v4_v0 = vld [vmem:[%s22_s0] ss:$0 sm:$0xff] }
   0x2   :  { %5 = vst [vmem:[%s23_s1] sm:$0xf] %v4_v0 }

// kernel: tile.19
= control target key start
LH: loop header
LB: loop body
LE: loop exit
PB: predicated region body
PF: predicated region fallthrough
CT: control target
= control target key end

     0   :  { %vm7_vm0 = vcmask 261120   ;;  %s37_s8 = smov 32   ;;  %s38_s9 = smov 64   ;;  %vm13_vm1 = vcmask 1048320   ;;  %vm19_vm2 = vcmask 785920   ;;  %vm25_vm3 = vcmask 523520   ;;  %s55_s0 = inlined_call_operand.vmem [shape: f32[4,32], index: 0, kind: input, shape index: {}]   ;;  %s56_s1 = inlined_call_operand.vmem [shape: f32[1,128], index: 1, kind: output, shape index: {}]  }
   0x1   :  { %v4_v0 = vld [vmem:[%s55_s0] sm:$0xf]  ;;  %s36_s0 = smov 96  }
   0x2   :  { %5 = vst [vmem:[#allocation1] sm:$0xf] %v4_v0 }
   0x9   :  { %v10_v1 = vld [vmem:[#allocation1 + $0x3] sm:$0x1]   ;;  %v22_v2 = vld [vmem:[#allocation1 + $0x1] sm:$0x1]   ;;  %v6_v3 = vld [vmem:[#allocation1] sm:$0x1]  }
   0xa   :  { %11 = vrot.lane.b32.xlu0 %v10_v1, %s36_s0  ;;  %23 = vrot.lane.b32.xlu1 %v22_v2, %s37_s8  ;;  %v16_v4 = vld [vmem:[#allocation1 + $0x2] sm:$0x1]   ;;  %8 = vst.msk [vmem:[#allocation0] sm:$0x1] %vm7_vm0, %v6_v3  }
   0xe   :  { %17 = vrot.lane.b32.xlu0 %v16_v4, %s38_s9 }
  0x7c   :  { %v12_v5 = vpop.permute.xlu0 %11   ;;  %v24_v6 = vpop.permute.xlu1 %23  }
  0x7d   :  { %14 = vst.msk [vmem:[#allocation0] sm:$0x1] %vm13_vm1, %v12_v5  }
  0x80   :  { %v18_v7 = vpop.permute.xlu0 %17  }
  0x81   :  { %20 = vst.msk [vmem:[#allocation0] sm:$0x1] %vm19_vm2, %v18_v7  }
  0x82   :  { %26 = vst.msk [vmem:[#allocation0] sm:$0x1] %vm25_vm3, %v24_v6  }
  0x89   :  { %v30_v8 = vld [vmem:[#allocation0] sm:$0x1] }
  0x8a   :  { %32 = vst [vmem:[%s56_s1] sm:$0x1] %v30_v8 }

// kernel: mlp_pallas.1
= control target key start
LH: loop header
LB: loop body
LE: loop exit
PB: predicated region body
PF: predicated region fallthrough
CT: control target
= control target key end

     0   :  { %v365_v3 = vmov 0.0   ;;  %s600_s1 = inlined_call_operand.vmem [shape: f32[128,256], index: 1, kind: input, shape index: {}]   ;;  %s601_s3 = inlined_call_operand.vmem [shape: f32[256,128], index: 3, kind: input, shape index: {}]   ;;  %s602_s0 = inlined_call_operand.vmem [shape: f32[4,128], index: 0, kind: input, shape index: {}]   ;;  %s603_s2 = inlined_call_operand.vmem [shape: f32[1,256], index: 2, kind: input, shape index: {}]   ;;  %s604_s4 = inlined_call_operand.vmem [shape: f32[1,128], index: 4, kind: input, shape index: {}]   ;;  %s605_s5 = inlined_call_operand.vmem [shape: f32[4,128], index: 5, kind: output, shape index: {}]  }
   0x1   :  { %v22_v0 = vld [vmem:[%s600_s1 + $0x8] sm:$0xff]  ;;  %v24_v1 = vld [vmem:[%s600_s1 + $0x18] sm:$0xff]  ;;  %v21_v2 = vld [vmem:[%s600_s1] sm:$0xff]  ;;  %129 = vmatprep.mubr.f32.mxu0 %v365_v3 }
   0x2   :  { %v296_v4 = vpack.c.bf16 %v24_v1, %v22_v0  ;;  %v23_v5 = vld [vmem:[%s600_s1 + $0x10] sm:$0xff]  ;;  %v26_v6 = vld [vmem:[%s600_s1 + $0x28] sm:$0xff]  ;;  %v28_v7 = vld [vmem:[%s600_s1 + $0x38] sm:$0xff] }
   0x3   :  { %v298_v8 = vpack.c.bf16 %v23_v5, %v21_v2  ;;  %v300_v9 = vpack.c.bf16 %v28_v7, %v26_v6  ;;  %v25_v10 = vld [vmem:[%s600_s1 + $0x20] sm:$0xff]  ;;  %v27_v11 = vld [vmem:[%s600_s1 + $0x30] sm:$0xff]  ;;  %v30_v12 = vld [vmem:[%s600_s1 + $0x48] sm:$0xff] }
   0x4   :  { %297 = vmatprep.subr.bf16.mxu0 %v296_v4  ;;  %v32_v13 = vld [vmem:[%s600_s1 + $0x58] sm:$0xff]  ;;  %v302_v14 = vpack.c.bf16 %v27_v11, %v25_v10  ;;  %v29_v16 = vld [vmem:[%s600_s1 + $0x40] sm:$0xff]  ;;  %v31_v17 = vld [vmem:[%s600_s1 + $0x50] sm:$0xff] }
   0x5   :  { %299 = vmatpush1.bf16.msra.mxu0 %v298_v8  ;;  %v304_v15 = vpack.c.bf16 %v32_v13, %v30_v12  ;;  %v34_v18 = vld [vmem:[%s600_s1 + $0x68] sm:$0xff]  ;;  %v36_v19 = vld [vmem:[%s600_s1 + $0x78] sm:$0xff]  ;;  %v306_v20 = vpack.c.bf16 %v31_v17, %v29_v16  ;;  %v33_v22 = vld [vmem:[%s600_s1 + $0x60] sm:$0xff] }
   0x6   :  { %301 = vmatprep.subr.bf16.mxu0 %v300_v9  ;;  %v308_v21 = vpack.c.bf16 %v36_v19, %v34_v18  ;;  %v35_v23 = vld [vmem:[%s600_s1 + $0x70] sm:$0xff]  ;;  %v38_v24 = vld [vmem:[%s600_s1 + $0x88] sm:$0xff]  ;;  %v40_v25 = vld [vmem:[%s600_s1 + $0x98] sm:$0xff] }
   0x7   :  { %v37_v26 = vld [vmem:[%s600_s1 + $0x80] sm:$0xff]  ;;  %v39_v27 = vld [vmem:[%s600_s1 + $0x90] sm:$0xff]  ;;  %v163_v29 = vld [vmem:[%s601_s3 + $0x88] sm:$0xff]  ;;  %v310_v31 = vpack.c.bf16 %v35_v23, %v33_v22  ;;  %v312_v36 = vpack.c.bf16 %v40_v25, %v38_v24 }
   0x8   :  { %v162_v28 = vld [vmem:[%s601_s3 + $0x80] sm:$0xff]  ;;  %v147_v33 = vld [vmem:[%s601_s3 + $0x8] sm:$0xff]  ;;  %v164_v34 = vld [vmem:[%s601_s3 + $0x90] sm:$0xff]  ;;  %v314_v46 = vpack.c.bf16 %v39_v27, %v37_v26 }
   0x9   :  { %303 = vmatpush1.bf16.msra.mxu0 %v302_v14  ;;  %v146_v30 = vld [vmem:[%s601_s3] sm:$0xff]  ;;  %v328_v32 = vpack.c.bf16 %v163_v29, %v162_v28  ;;  %v165_v35 = vld [vmem:[%s601_s3 + $0x98] sm:$0xff]  ;;  %v148_v39 = vld [vmem:[%s601_s3 + $0x10] sm:$0xff] }
   0xa   :  { %305 = vmatprep.subr.bf16.mxu0 %v304_v15  ;;  %v330_v37 = vpack.c.bf16 %v147_v33, %v146_v30  ;;  %v332_v38 = vpack.c.bf16 %v165_v35, %v164_v34  ;;  %v149_v40 = vld [vmem:[%s601_s3 + $0x18] sm:$0xff]  ;;  %v166_v41 = vld [vmem:[%s601_s3 + $0xa0] sm:$0xff]  ;;  %v42_v42 = vld [vmem:[%s600_s1 + $0xa8] sm:$0xff]  ;;  %v55_v34 = vlaneseq }
   0xb   :  { %v44_v43 = vld [vmem:[%s600_s1 + $0xb8] sm:$0xff]  ;;  %329 = vmatprep.subr.bf16.mxu1 %v328_v32  ;;  %v167_v44 = vld [vmem:[%s601_s3 + $0xa8] sm:$0xff]  ;;  %v334_v45 = vpack.c.bf16 %v149_v40, %v148_v39  ;;  %v150_v48 = vld [vmem:[%s601_s3 + $0x20] sm:$0xff] }
   0xc   :  { %331 = vmatpush3.bf16.msra.mxu1 %v330_v37  ;;  %v336_v47 = vpack.c.bf16 %v167_v44, %v166_v41  ;;  %v151_v49 = vld [vmem:[%s601_s3 + $0x28] sm:$0xff]  ;;  %v316_v50 = vpack.c.bf16 %v44_v43, %v42_v42  ;;  %v41_v51 = vld [vmem:[%s600_s1 + $0xa0] sm:$0xff]  ;;  %v43_v52 = vld [vmem:[%s600_s1 + $0xb0] sm:$0xff]  ;;  %v56_v35 = vshrl.u32 %v55_v34, 7 }
   0xd   :  { %307 = vmatpush1.bf16.msra.mxu0 %v306_v20  ;;  %333 = vmatprep.subr.bf16.mxu1 %v332_v38  ;;  %v46_v53 = vld [vmem:[%s600_s1 + $0xc8] sm:$0xff]  ;;  %v48_v54 = vld [vmem:[%s600_s1 + $0xd8] sm:$0xff]  ;;  %v338_v55 = vpack.c.bf16 %v151_v49, %v150_v48  ;;  %v318_v56 = vpack.c.bf16 %v43_v52, %v41_v51  ;;  %v45_v58 = vld [vmem:[%s600_s1 + $0xc0] sm:$0xff] }
   0xe   :  { %309 = vmatprep.subr.bf16.mxu0 %v308_v21  ;;  %v320_v57 = vpack.c.bf16 %v48_v54, %v46_v53  ;;  %v47_v59 = vld [vmem:[%s600_s1 + $0xd0] sm:$0xff]  ;;  %v50_v60 = vld [vmem:[%s600_s1 + $0xe8] sm:$0xff]  ;;  %v52_v61 = vld [vmem:[%s600_s1 + $0xf8] sm:$0xff]  ;;  %v61_v38 = vsub.s32 1, %v56_v35 }
   0xf   :  { %v322_v62 = vpack.c.bf16 %v47_v59, %v45_v58  ;;  %v324_v63 = vpack.c.bf16 %v52_v61, %v50_v60  ;;  %v49_v0 = vld [vmem:[%s600_s1 + $0xe0] sm:$0xff]  ;;  %v51_v1 = vld [vmem:[%s600_s1 + $0xf0] sm:$0xff]  ;;  %v169_v5 = vld [vmem:[%s601_s3 + $0xb8] sm:$0xff] }
  0x10   :  { %335 = vmatpush3.bf16.msra.mxu1 %v334_v45  ;;  %v326_v2 = vpack.c.bf16 %v51_v1, %v49_v0  ;;  %v20_v3 = vld [vmem:[%s602_s0] sm:$0xf]  ;;  %v168_v4 = vld [vmem:[%s601_s3 + $0xb0] sm:$0xff]  ;;  %v153_v8 = vld [vmem:[%s601_s3 + $0x38] sm:$0xff] }
  0x11   :  { %311 = vmatpush1.bf16.msra.mxu0 %v310_v31  ;;  %337 = vmatprep.subr.bf16.mxu1 %v336_v47  ;;  %v340_v6 = vpack.c.bf16 %v169_v5, %v168_v4  ;;  %v152_v7 = vld [vmem:[%s601_s3 + $0x30] sm:$0xff]  ;;  %v170_v10 = vld [vmem:[%s601_s3 + $0xc0] sm:$0xff]  ;;  %v171_v11 = vld [vmem:[%s601_s3 + $0xc8] sm:$0xff] }
  0x12   :  { %313 = vmatprep.subr.bf16.mxu0 %v312_v36  ;;  %v342_v9 = vpack.c.bf16 %v153_v8, %v152_v7  ;;  %v344_v12 = vpack.c.bf16 %v171_v11, %v170_v10  ;;  %v154_v13 = vld [vmem:[%s601_s3 + $0x40] sm:$0xff]  ;;  %v155_v14 = vld [vmem:[%s601_s3 + $0x48] sm:$0xff]  ;;  %v172_v16 = vld [vmem:[%s601_s3 + $0xd0] sm:$0xff]  ;;  %v57_v36 = vsub.s32 0, %v56_v35 }
  0x13   :  { %v346_v15 = vpack.c.bf16 %v155_v14, %v154_v13  ;;  %v173_v17 = vld [vmem:[%s601_s3 + $0xd8] sm:$0xff]  ;;  %v156_v19 = vld [vmem:[%s601_s3 + $0x50] sm:$0xff]  ;;  %v174_v22 = vld [vmem:[%s601_s3 + $0xe0] sm:$0xff] }
  0x14   :  { %339 = vmatpush3.bf16.msra.mxu1 %v338_v55  ;;  %v348_v18 = vpack.c.bf16 %v173_v17, %v172_v16  ;;  %v157_v20 = vld [vmem:[%s601_s3 + $0x58] sm:$0xff]  ;;  %v175_v23 = vld [vmem:[%s601_s3 + $0xe8] sm:$0xff]  ;;  %v158_v25 = vld [vmem:[%s601_s3 + $0x60] sm:$0xff] }
  0x15   :  { %315 = vmatpush1.bf16.msra.mxu0 %v314_v46  ;;  %341 = vmatprep.subr.bf16.mxu1 %v340_v6  ;;  %v350_v21 = vpack.c.bf16 %v157_v20, %v156_v19  ;;  %v352_v24 = vpack.c.bf16 %v175_v23, %v174_v22  ;;  %v159_v26 = vld [vmem:[%s601_s3 + $0x68] sm:$0xff]  ;;  %v176_v28 = vld [vmem:[%s601_s3 + $0xf0] sm:$0xff]  ;;  %v177_v29 = vld [vmem:[%s601_s3 + $0xf8] sm:$0xff] }
  0x16   :  { %317 = vmatprep.subr.bf16.mxu0 %v316_v50  ;;  %v354_v27 = vpack.c.bf16 %v159_v26, %v158_v25  ;;  %v356_v30 = vpack.c.bf16 %v177_v29, %v176_v28  ;;  %v160_v31 = vld [vmem:[%s601_s3 + $0x70] sm:$0xff]  ;;  %v161_v32 = vld [vmem:[%s601_s3 + $0x78] sm:$0xff]  ;;  %v53_v37 = vld [vmem:[%s603_s2] sm:$0x3] }
  0x17   :  { %v358_v33 = vpack.c.bf16 %v161_v32, %v160_v31  ;;  %v58_v39 = vrot.slane %v53_v37, %v57_v36  ;;  %v62_v40 = vrot.slane %v53_v37, %v61_v38 }
  0x18   :  { %343 = vmatpush3.bf16.msra.mxu1 %v342_v9 }
  0x19   :  { %319 = vmatpush1.bf16.msra.mxu0 %v318_v56  ;;  %345 = vmatprep.subr.bf16.mxu1 %v344_v12  ;;  %v260_v56 = vld [vmem:[%s604_s4] ss:$0 sm:$0xff] }
  0x1a   :  { %321 = vmatprep.subr.bf16.mxu0 %v320_v57 }
  0x1c   :  { %347 = vmatpush3.bf16.msra.mxu1 %v346_v15 }
  0x1d   :  { %323 = vmatpush1.bf16.msra.mxu0 %v322_v62  ;;  %349 = vmatprep.subr.bf16.mxu1 %v348_v18 }
  0x1e   :  { %325 = vmatprep.subr.bf16.mxu0 %v324_v63 }
  0x20   :  { %351 = vmatpush3.bf16.msra.mxu1 %v350_v21 }
  0x21   :  { %327 = vmatpush1.bf16.msra.mxu0 %v326_v2  ;;  %353 = vmatprep.subr.bf16.mxu1 %v352_v24 }
  0x24   :  { %130 = vmatmul.mubr.f32.vlgmr.msra.gmra.mrb[0].mxu0 %v20_v3  ;;  %355 = vmatpush3.bf16.msra.mxu1 %v354_v27 }
  0x25   :  { %357 = vmatprep.subr.bf16.mxu1 %v356_v30 }
  0x28   :  { %359 = vmatpush3.bf16.msra.mxu1 %v358_v33 }
  0xf7   :  { %v131_v41 = vpop.f32.mrb[0].mxu0 }
  0xf8   :  { %v132_v42 = vadd.f32 %v131_v41, %v58_v39  ;;  %v133_v43 = vpop.f32.mrb[1].mxu0 }
  0xf9   :  { %v134_v44 = vadd.f32 %v133_v43, %v62_v40 }
  0xfa   :  { %v138_v45 = vmul.f32 0.70710677, %v132_v42  ;;  %v136_v52 = vmul.f32 0.5, %v132_v42 }
  0xfb   :  { %v139_v46 = vmul.f32 0.70710677, %v134_v44  ;;  %v137_v50 = vmul.f32 0.5, %v134_v44 }
  0xfc   :  { %361 = verf.f32 %v138_v45 }
  0xfd   :  { %363 = verf.f32 %v139_v46 }
 0x106   :  { %v362_v47 = vpop.eup %361 }
 0x107   :  { %v364_v48 = vpop.eup %363  ;;  %v142_v49 = vadd.f32 1.0, %v362_v47 }
 0x108   :  { %v143_v51 = vadd.f32 1.0, %v364_v48 }
 0x109   :  { %v144_v54 = vmul.f32 %v142_v49, %v136_v52 }
 0x10a   :  { %v145_v53 = vmul.f32 %v143_v51, %v137_v50 }
 0x10c   :  { %249 = vmatprep.mubr.f32.mxu1 %v145_v53 }
 0x10d   :  { %250 = vmatmul.mubr.f32.vlgmr.msra.gmra.mrb[0].mxu1 %v144_v54 }
 0x1e0   :  { %v293_v55 = vpop.f32.mrb[0].mxu1 }
 0x1e1   :  { %v294_v57 = vpop.f32.mrb[1].mxu1 }
 0x1e2   :  { %v295_v58 = vadd.f32 %v294_v57, %v293_v55 }
 0x1e4   :  { %v252_v59 = vadd.f32 %v295_v58, %v260_v56 }
 0x1e6   :  { %255 = vst [vmem:[%s605_s5] sm:$0xf] %v252_v59 }

</bundles_post_ra>
